<compile_context>
chip_gen: v5e
topology: v5e:2x2
jax: 0.10.0
libtpu: 0.0.40
codegen_flags: <defaults>
</compile_context>

<pallas_src>
import math
from functools import partial

import jax
import jax.numpy as jnp
from jax.experimental import pallas as pl
from jax.experimental.pallas import tpu as pltpu


def _round_up(x, m):
    return ((x + m - 1) // m) * m


def _nbytes(shape, dtype):
    n = 1
    for s in shape:
        n *= int(s)
    return n * jnp.dtype(dtype).itemsize


# ---------------------------------------------------------------------------
# Kernel: one grid step == one RNN layer; MLP head fused into the last step.
# ---------------------------------------------------------------------------
def _rnn_layer_kernel(hidden_pad,
                      x_ref, h_ref, wx_ref, wh_ref, b_ref, wmlp_ref, bmlp_ref,
                      y_ref, hout_ref, carry_ref):
    """
    x_ref     : (B_PAD, PK)       padded x_t (resident across the grid)
    h_ref     : (1, B_PAD, PH)    this layer's padded h_t block
    wx_ref    : (1, PK, PH)       W_ih.T for this layer (bf16, zero-padded)
    wh_ref    : (1, PH, PH)       W_hh.T for this layer (bf16, zero-padded)
    b_ref     : (1, 1, PH)        b_ih + b_hh for this layer (f32)
    wmlp_ref  : (PH, P_OUT)       W_mlp.T (bf16, resident)
    bmlp_ref  : (1, P_OUT)        b_mlp (f32, resident)
    y_ref     : (B_PAD, P_OUT)    padded y_{t+1} (written on last layer only)
    hout_ref  : (1, B_PAD, PH)    this layer's padded h_{t+1} block
    carry_ref : (B_PAD, PK)       VMEM scratch carrying the layer input (f32)
    """
    layer = pl.program_id(0)

    @pl.when(layer == 0)
    def _():
        carry_ref[...] = x_ref[...]

    # Two MXU pushes (x-side and h-side); operands cast to bf16 at the dot
    # only, f32 accumulation, f32 bias/tanh.
    pre = (
        jnp.dot(carry_ref[...].astype(jnp.bfloat16), wx_ref[0],
                preferred_element_type=jnp.float32)
        + jnp.dot(h_ref[0].astype(jnp.bfloat16), wh_ref[0],
                  preferred_element_type=jnp.float32)
        + b_ref[0]
    )
    h_new = jnp.tanh(pre)                      # (B_PAD, PH), f32
    hout_ref[0] = h_new
    carry_ref[:, :hidden_pad] = h_new          # feed next layer (stays in VMEM)

    @pl.when(layer == pl.num_programs(0) - 1)
    def _():
        y_ref[...] = (
            jnp.dot(h_new.astype(jnp.bfloat16), wmlp_ref[...],
                    preferred_element_type=jnp.float32)
            + bmlp_ref[...]
        )


# ---------------------------------------------------------------------------
# Parameter init (PyTorch-style uniform(-k, k)) and packing for the kernel
# ---------------------------------------------------------------------------
def init_params(key, input_size, hidden_size, num_layers):
    k = 1.0 / math.sqrt(hidden_size)
    layers = []
    for l in range(num_layers):
        in_sz = input_size if l == 0 else hidden_size
        key, k1, k2, k3, k4 = jax.random.split(key, 5)
        w_ih = jax.random.uniform(k1, (hidden_size, in_sz), jnp.float32, -k, k)
        w_hh = jax.random.uniform(k2, (hidden_size, hidden_size), jnp.float32, -k, k)
        b_ih = jax.random.uniform(k3, (1, hidden_size), jnp.float32, -k, k)
        b_hh = jax.random.uniform(k4, (1, hidden_size), jnp.float32, -k, k)
        layers.append((w_ih, w_hh, b_ih, b_hh))
    key, k5, k6 = jax.random.split(key, 3)
    mlp_w = jax.random.uniform(k5, (input_size, hidden_size), jnp.float32, -k, k)
    mlp_b = jax.random.uniform(k6, (1, input_size), jnp.float32, -k, k)
    return {"layers": layers, "mlp_w": mlp_w, "mlp_b": mlp_b}


def pack_params(params, input_size, hidden_size, num_layers):
    """Pre-transpose, pre-sum biases, pad to (8,128) tiles, cast weights to bf16."""
    # x-side contraction pad: all layers share one stacked array, so pad to the
    # max of (input pad, hidden pad).  Zero rows beyond each layer's true
    # contraction size keep padding inert.
    # TODO(synk): if input_size and hidden_size differ a lot, store layer 0's
    #             W_ih separately to avoid streaming structural-zero rows.
    PK = max(_round_up(input_size, 128), _round_up(hidden_size, 128))
    PH = _round_up(hidden_size, 128)
    P_OUT = _round_up(input_size, 128)

    wx = jnp.zeros((num_layers, PK, PH), jnp.float32)
    wh = jnp.zeros((num_layers, PH, PH), jnp.float32)
    bias = jnp.zeros((num_layers, 1, PH), jnp.float32)
    for l, (w_ih, w_hh, b_ih, b_hh) in enumerate(params["layers"]):
        in_sz = w_ih.shape[1]
        wx = wx.at[l, :in_sz, :hidden_size].set(w_ih.T)
        wh = wh.at[l, :hidden_size, :hidden_size].set(w_hh.T)
        bias = bias.at[l, 0, :hidden_size].set((b_ih + b_hh).reshape(-1))

    wmlp = jnp.zeros((PH, P_OUT), jnp.float32)
    wmlp = wmlp.at[:hidden_size, :input_size].set(params["mlp_w"].T)
    bmlp = jnp.zeros((1, P_OUT), jnp.float32)
    bmlp = bmlp.at[0, :input_size].set(params["mlp_b"].reshape(-1))

    return {
        "wx": wx.astype(jnp.bfloat16),      # streamed weights in bf16
        "wh": wh.astype(jnp.bfloat16),
        "bias": bias,                        # biases stay f32 (elementwise path)
        "wmlp": wmlp.astype(jnp.bfloat16),
        "bmlp": bmlp,
    }


# ---------------------------------------------------------------------------
# Forward wrapper: pad, run the layer-streamed kernel, slice back
# ---------------------------------------------------------------------------
def rnn_forward(x_t, h_t, packed, *, input_size, hidden_size):
    """Mirrors RNN.forward: returns (y_{t+1}, h_{t+1})."""
    L, B, H = h_t.shape
    PK = packed["wx"].shape[1]
    PH = packed["wh"].shape[1]
    P_OUT = packed["wmlp"].shape[1]
    B_PAD = _round_up(B, 8)

    x_pad = jnp.zeros((B_PAD, PK), jnp.float32).at[:B, :input_size].set(x_t)
    h_pad = jnp.zeros((L, B_PAD, PH), jnp.float32).at[:, :B, :H].set(h_t)

    # Explicit scoped-VMEM budget: per-block sizes (double-buffered) + scratch,
    # with headroom; floored at 32 MiB, capped at 64 MiB (v7x physical).
    need = (
        2 * _nbytes((B_PAD, PK), jnp.float32)
        + 2 * _nbytes((1, B_PAD, PH), jnp.float32)
        + 2 * _nbytes((1, PK, PH), jnp.bfloat16)
        + 2 * _nbytes((1, PH, PH), jnp.bfloat16)
        + 2 * _nbytes((1, 1, PH), jnp.float32)
        + 2 * _nbytes((PH, P_OUT), jnp.bfloat16)
        + 2 * _nbytes((1, P_OUT), jnp.float32)
        + 2 * _nbytes((B_PAD, P_OUT), jnp.float32)
        + 2 * _nbytes((1, B_PAD, PH), jnp.float32)
        + _nbytes((B_PAD, PK), jnp.float32)
    )
    vmem_limit = min(max(2 * need + (1 << 20), 32 << 20), 64 << 20)

    y_pad, hout_pad = pl.pallas_call(
        partial(_rnn_layer_kernel, PH),
        out_shape=(
            jax.ShapeDtypeStruct((B_PAD, P_OUT), jnp.float32),
            jax.ShapeDtypeStruct((L, B_PAD, PH), jnp.float32),
        ),
        grid_spec=pltpu.PrefetchScalarGridSpec(
            num_scalar_prefetch=0,
            grid=(L,),
            in_specs=[
                pl.BlockSpec((B_PAD, PK), lambda l: (0, 0)),        # x (resident)
                pl.BlockSpec((1, B_PAD, PH), lambda l: (l, 0, 0)),  # h_t[l]
                pl.BlockSpec((1, PK, PH), lambda l: (l, 0, 0)),     # W_ih.T[l]
                pl.BlockSpec((1, PH, PH), lambda l: (l, 0, 0)),     # W_hh.T[l]
                pl.BlockSpec((1, 1, PH), lambda l: (l, 0, 0)),      # bias[l]
                pl.BlockSpec((PH, P_OUT), lambda l: (0, 0)),        # W_mlp.T
                pl.BlockSpec((1, P_OUT), lambda l: (0, 0)),         # b_mlp
            ],
            out_specs=(
                pl.BlockSpec((B_PAD, P_OUT), lambda l: (0, 0)),     # y (last layer)
                pl.BlockSpec((1, B_PAD, PH), lambda l: (l, 0, 0)),  # h_{t+1}[l]
            ),
            scratch_shapes=[pltpu.VMEM((B_PAD, PK), jnp.float32)],  # layer carry
        ),
        input_output_aliases={1: 1},  # update the hidden state in place
        compiler_params=pltpu.CompilerParams(
            dimension_semantics=("arbitrary",),  # sequential carry over layers
            vmem_limit_bytes=int(vmem_limit),
        ),
    )(x_pad, h_pad, packed["wx"], packed["wh"], packed["bias"],
      packed["wmlp"], packed["bmlp"])

    y_t_plus_1 = y_pad[:B, :input_size]
    h_t_plus_1 = hout_pad[:, :B, :H]
    return y_t_plus_1, h_t_plus_1


# ---------------------------------------------------------------------------
# Pure-JAX f32 reference for verification (uses the raw, unpadded parameters)
# ---------------------------------------------------------------------------
def rnn_forward_ref(x_t, h_t, params):
    layer_in = x_t
    h_next = []
    for l in range(h_t.shape[0]):
        w_ih, w_hh, b_ih, b_hh = params["layers"][l]
        h_l = jnp.tanh(layer_in @ w_ih.T + b_ih + h_t[l] @ w_hh.T + b_hh)
        h_next.append(h_l)
        layer_in = h_l
    y = layer_in @ params["mlp_w"].T + params["mlp_b"]
    return y, jnp.stack(h_next, axis=0)


if __name__ == "__main__":
    batch = 2
    input_size = 16
    hidden_size = 32
    num_layers = 2

    key = jax.random.PRNGKey(0)
    key, kx, kh, kp = jax.random.split(key, 4)
    x_t = jax.random.normal(kx, (batch, input_size), jnp.float32)
    h_t = jax.random.normal(kh, (num_layers, batch, hidden_size), jnp.float32)
    params = init_params(kp, input_size, hidden_size, num_layers)
    packed = pack_params(params, input_size, hidden_size, num_layers)

    fwd = jax.jit(partial(rnn_forward, input_size=input_size, hidden_size=hidden_size))
    y_next, h_next = fwd(x_t, h_t, packed)
    y_next = jax.block_until_ready(y_next)
    h_next = jax.block_until_ready(h_next)

    y_ref, h_ref_out = rnn_forward_ref(x_t, h_t, params)
    assert y_next.shape == (batch, input_size)
    assert h_next.shape == (num_layers, batch, hidden_size)
    # bf16 weight/operand quantization (f32 accumulation) => relaxed tolerance
    # vs. the pure-f32 reference.
    assert jnp.allclose(y_next, y_ref, atol=3e-2, rtol=3e-2), \
        f"y mismatch: max abs err {jnp.max(jnp.abs(y_next - y_ref))}"
    assert jnp.allclose(h_next, h_ref_out, atol=3e-2, rtol=3e-2), \
        f"h mismatch: max abs err {jnp.max(jnp.abs(h_next - h_ref_out))}"

    print("KERNEL_OK")
</pallas_src>

<mosaic_0001>
module attributes {stable_mosaic.version = 11 : i64} {
  func.func @_rnn_layer_kernel(%arg0: i32, %arg1: memref<8x128xf32, #tpu.memory_space<vmem>>, %arg2: memref<1x8x128xf32, #tpu.memory_space<vmem>>, %arg3: memref<1x128x128xbf16, #tpu.memory_space<vmem>>, %arg4: memref<1x128x128xbf16, #tpu.memory_space<vmem>>, %arg5: memref<1x1x128xf32, #tpu.memory_space<vmem>>, %arg6: memref<128x128xbf16, #tpu.memory_space<vmem>>, %arg7: memref<1x128xf32, #tpu.memory_space<vmem>>, %arg8: memref<8x128xf32, #tpu.memory_space<vmem>>, %arg9: memref<1x8x128xf32, #tpu.memory_space<vmem>>, %arg10: memref<8x128xf32, #tpu.memory_space<vmem>>) attributes {dimension_semantics = [#tpu.dimension_semantics<arbitrary>], iteration_bounds = array<i64: 2>, scalar_prefetch = 0 : i64, scratch_operands = 1 : i64, tpu.core_type = #tpu.core_type<tc>, window_params = [{pipeline_mode = #tpu.pipeline_mode<synchronous>, transform_indices = @transform_0, window_bounds = array<i64: 8, 128>}, {transform_indices = @transform_1, window_bounds = array<i64: 1, 8, 128>}, {transform_indices = @transform_2, window_bounds = array<i64: 1, 128, 128>}, {transform_indices = @transform_3, window_bounds = array<i64: 1, 128, 128>}, {transform_indices = @transform_4, window_bounds = array<i64: 1, 1, 128>}, {pipeline_mode = #tpu.pipeline_mode<synchronous>, transform_indices = @transform_5, window_bounds = array<i64: 128, 128>}, {pipeline_mode = #tpu.pipeline_mode<synchronous>, transform_indices = @transform_6, window_bounds = array<i64: 1, 128>}, {pipeline_mode = #tpu.pipeline_mode<synchronous>, transform_indices = @transform_7, window_bounds = array<i64: 8, 128>}, {transform_indices = @transform_8, window_bounds = array<i64: 1, 8, 128>}]} {
    %c0_i32 = arith.constant 0 : i32
    %0 = arith.cmpi eq, %arg0, %c0_i32 : i32
    %1 = arith.extui %0 : i1 to i32
    %c0_i32_0 = arith.constant 0 : i32
    %2 = arith.cmpi ne, %1, %c0_i32_0 : i32
    scf.if %2 {
      %c0_21 = arith.constant 0 : index
      %c0_22 = arith.constant 0 : index
      %27 = vector.load %arg1[%c0_21, %c0_22] : memref<8x128xf32, #tpu.memory_space<vmem>>, vector<8x128xf32>
      %c0_23 = arith.constant 0 : index
      %c0_24 = arith.constant 0 : index
      %28 = vector.load %arg10[%c0_23, %c0_24] : memref<8x128xf32, #tpu.memory_space<vmem>>, vector<8x128xf32>
      tpu.vector_store %arg10[%c0_23, %c0_24], %27 {strides = array<i32>} : memref<8x128xf32, #tpu.memory_space<vmem>>, vector<8x128xf32>,
    } else {
    }
    %c0 = arith.constant 0 : index
    %c0_1 = arith.constant 0 : index
    %3 = vector.load %arg10[%c0, %c0_1] : memref<8x128xf32, #tpu.memory_space<vmem>>, vector<8x128xf32>
    %4 = arith.truncf %3 : vector<8x128xf32> to vector<8x128xbf16>
    %c0_2 = arith.constant 0 : index
    %c0_3 = arith.constant 0 : index
    %c0_4 = arith.constant 0 : index
    %5 = vector.load %arg3[%c0_2, %c0_3, %c0_4] : memref<1x128x128xbf16, #tpu.memory_space<vmem>>, vector<1x128x128xbf16>
    %6 = vector.shape_cast %5 : vector<1x128x128xbf16> to vector<128x128xbf16>
    %cst = arith.constant dense<0.000000e+00> : vector<8x128xf32>
    %7 = tpu.matmul %4, %6, %cst {dimension_numbers = #tpu.dot_dimension_numbers<[1], [0], [0], [1], [0, 0, 1, 1], [], []>} : vector<8x128xbf16>, vector<128x128xbf16>, vector<8x128xf32> -> vector<8x128xf32>
    %c0_5 = arith.constant 0 : index
    %c0_6 = arith.constant 0 : index
    %c0_7 = arith.constant 0 : index
    %8 = vector.load %arg2[%c0_5, %c0_6, %c0_7] : memref<1x8x128xf32, #tpu.memory_space<vmem>>, vector<1x8x128xf32>
    %9 = vector.shape_cast %8 : vector<1x8x128xf32> to vector<8x128xf32>
    %10 = arith.truncf %9 : vector<8x128xf32> to vector<8x128xbf16>
    %c0_8 = arith.constant 0 : index
    %c0_9 = arith.constant 0 : index
    %c0_10 = arith.constant 0 : index
    %11 = vector.load %arg4[%c0_8, %c0_9, %c0_10] : memref<1x128x128xbf16, #tpu.memory_space<vmem>>, vector<1x128x128xbf16>
    %12 = vector.shape_cast %11 : vector<1x128x128xbf16> to vector<128x128xbf16>
    %cst_11 = arith.constant dense<0.000000e+00> : vector<8x128xf32>
    %13 = tpu.matmul %10, %12, %cst_11 {dimension_numbers = #tpu.dot_dimension_numbers<[1], [0], [0], [1], [0, 0, 1, 1], [], []>} : vector<8x128xbf16>, vector<128x128xbf16>, vector<8x128xf32> -> vector<8x128xf32>
    %14 = arith.addf %7, %13 : vector<8x128xf32>
    %c0_12 = arith.constant 0 : index
    %c0_13 = arith.constant 0 : index
    %c0_14 = arith.constant 0 : index
    %15 = vector.load %arg5[%c0_12, %c0_13, %c0_14] : memref<1x1x128xf32, #tpu.memory_space<vmem>>, vector<1x1x128xf32>
    %16 = vector.shape_cast %15 : vector<1x1x128xf32> to vector<1x128xf32>
    %17 = vector.broadcast %16 : vector<1x128xf32> to vector<8x128xf32>
    %18 = arith.addf %14, %17 : vector<8x128xf32>
    %19 = math.tanh %18 : vector<8x128xf32>
    %c0_15 = arith.constant 0 : index
    %c0_16 = arith.constant 0 : index
    %c0_17 = arith.constant 0 : index
    %20 = vector.load %arg9[%c0_15, %c0_16, %c0_17] : memref<1x8x128xf32, #tpu.memory_space<vmem>>, vector<1x8x128xf32>
    %21 = vector.shape_cast %20 : vector<1x8x128xf32> to vector<8x128xf32>
    %22 = vector.shape_cast %19 : vector<8x128xf32> to vector<1x8x128xf32>
    tpu.vector_store %arg9[%c0_15, %c0_16, %c0_17], %22 {strides = array<i32>} : memref<1x8x128xf32, #tpu.memory_space<vmem>>, vector<1x8x128xf32>,
    %c0_18 = arith.constant 0 : index
    %c0_19 = arith.constant 0 : index
    %23 = vector.load %arg10[%c0_18, %c0_19] : memref<8x128xf32, #tpu.memory_space<vmem>>, vector<8x128xf32>
    tpu.vector_store %arg10[%c0_18, %c0_19], %19 {strides = array<i32>} : memref<8x128xf32, #tpu.memory_space<vmem>>, vector<8x128xf32>,
    %c1_i32 = arith.constant 1 : i32
    %24 = arith.cmpi eq, %arg0, %c1_i32 : i32
    %25 = arith.extui %24 : i1 to i32
    %c0_i32_20 = arith.constant 0 : i32
    %26 = arith.cmpi ne, %25, %c0_i32_20 : i32
    scf.if %26 {
      %27 = arith.truncf %19 : vector<8x128xf32> to vector<8x128xbf16>
      %c0_21 = arith.constant 0 : index
      %c0_22 = arith.constant 0 : index
      %28 = vector.load %arg6[%c0_21, %c0_22] : memref<128x128xbf16, #tpu.memory_space<vmem>>, vector<128x128xbf16>
      %cst_23 = arith.constant dense<0.000000e+00> : vector<8x128xf32>
      %29 = tpu.matmul %27, %28, %cst_23 {dimension_numbers = #tpu.dot_dimension_numbers<[1], [0], [0], [1], [0, 0, 1, 1], [], []>} : vector<8x128xbf16>, vector<128x128xbf16>, vector<8x128xf32> -> vector<8x128xf32>
      %c0_24 = arith.constant 0 : index
      %c0_25 = arith.constant 0 : index
      %30 = vector.load %arg7[%c0_24, %c0_25] : memref<1x128xf32, #tpu.memory_space<vmem>>, vector<1x128xf32>
      %31 = vector.broadcast %30 : vector<1x128xf32> to vector<8x128xf32>
      %32 = arith.addf %29, %31 : vector<8x128xf32>
      %c0_26 = arith.constant 0 : index
      %c0_27 = arith.constant 0 : index
      %33 = vector.load %arg8[%c0_26, %c0_27] : memref<8x128xf32, #tpu.memory_space<vmem>>, vector<8x128xf32>
      tpu.vector_store %arg8[%c0_26, %c0_27], %32 {strides = array<i32>} : memref<8x128xf32, #tpu.memory_space<vmem>>, vector<8x128xf32>,
    } else {
    }
    return
  }
  func.func @transform_0(%arg0: i32) -> (i32, i32) {
    %c0_i32 = arith.constant 0 : i32
    %c0_i32_0 = arith.constant 0 : i32
    %c0_i32_1 = arith.constant 0 : i32
    return %c0_i32, %c0_i32_0 : i32, i32
  }
  func.func @transform_1(%arg0: i32) -> (i32, i32, i32) {
    %c0_i32 = arith.constant 0 : i32
    %c0_i32_0 = arith.constant 0 : i32
    %c0_i32_1 = arith.constant 0 : i32
    return %arg0, %c0_i32, %c0_i32_0 : i32, i32, i32
  }
  func.func @transform_2(%arg0: i32) -> (i32, i32, i32) {
    %c0_i32 = arith.constant 0 : i32
    %c0_i32_0 = arith.constant 0 : i32
    %c0_i32_1 = arith.constant 0 : i32
    return %arg0, %c0_i32, %c0_i32_0 : i32, i32, i32
  }
  func.func @transform_3(%arg0: i32) -> (i32, i32, i32) {
    %c0_i32 = arith.constant 0 : i32
    %c0_i32_0 = arith.constant 0 : i32
    %c0_i32_1 = arith.constant 0 : i32
    return %arg0, %c0_i32, %c0_i32_0 : i32, i32, i32
  }
  func.func @transform_4(%arg0: i32) -> (i32, i32, i32) {
    %c0_i32 = arith.constant 0 : i32
    %c0_i32_0 = arith.constant 0 : i32
    %c0_i32_1 = arith.constant 0 : i32
    return %arg0, %c0_i32, %c0_i32_0 : i32, i32, i32
  }
  func.func @transform_5(%arg0: i32) -> (i32, i32) {
    %c0_i32 = arith.constant 0 : i32
    %c0_i32_0 = arith.constant 0 : i32
    %c0_i32_1 = arith.constant 0 : i32
    return %c0_i32, %c0_i32_0 : i32, i32
  }
  func.func @transform_6(%arg0: i32) -> (i32, i32) {
    %c0_i32 = arith.constant 0 : i32
    %c0_i32_0 = arith.constant 0 : i32
    %c0_i32_1 = arith.constant 0 : i32
    return %c0_i32, %c0_i32_0 : i32, i32
  }
  func.func @transform_7(%arg0: i32) -> (i32, i32) {
    %c0_i32 = arith.constant 0 : i32
    %c0_i32_0 = arith.constant 0 : i32
    %c0_i32_1 = arith.constant 0 : i32
    return %c0_i32, %c0_i32_0 : i32, i32
  }
  func.func @transform_8(%arg0: i32) -> (i32, i32, i32) {
    %c0_i32 = arith.constant 0 : i32
    %c0_i32_0 = arith.constant 0 : i32
    %c0_i32_1 = arith.constant 0 : i32
    return %arg0, %c0_i32, %c0_i32_0 : i32, i32, i32
  }
}

</mosaic_0001>

<bundles_post_ra>
// kernel: rnn_forward.1
= control target key start
LH: loop header
LB: loop body
LE: loop exit
PB: predicated region body
PF: predicated region fallthrough
CT: control target
= control target key end

     0   :  { %s1374_s0 = inlined_call_operand.vmem [shape: f32[8,128], index: 0, kind: input, shape index: {}]   ;;  %s1375_s1 = inlined_call_operand.vmem [shape: f32[2,8,128], index: 1, kind: input, shape index: {}, may-alias: {1,8}]   ;;  %s1376_s2 = inlined_call_operand.hbm [shape: bf16[2,128,128], index: 2, kind: input, shape index: {}]   ;;  %s1377_s3 = inlined_call_operand.hbm [shape: bf16[2,128,128], index: 3, kind: input, shape index: {}]   ;;  %s1378_s4 = inlined_call_operand.vmem [shape: f32[2,1,128], index: 4, kind: input, shape index: {}]   ;;  %s1379_s5 = inlined_call_operand.hbm [shape: bf16[128,128], index: 5, kind: input, shape index: {}]   ;;  %s1380_s6 = inlined_call_operand.vmem [shape: f32[1,128], index: 6, kind: input, shape index: {}]   ;;  %s1381_s7 = inlined_call_operand.vmem [shape: f32[8,128], index: 7, kind: output, shape index: {0}]   ;;  %s1382_s8 = inlined_call_operand.vmem [shape: f32[2,8,128], index: 8, kind: output, shape index: {1}, may-alias: {1,8}]  }
   0x1   :  { %1388 = sst [smem:[#allocation13_spill]] %s1376_s2 }
   0x2   :  { %1389 = sst [smem:[#allocation14_spill]] %s1379_s5 }
   0x3   :  { %14 = vsyncpa [#allocation4], 0 }
   0x4   :  { %16 = vsyncpa [#allocation4 + $0x1], 0 }
   0x5   :  { %17 = vsyncpa [#allocation6], 0 }
   0x6   :  { %19 = vsyncpa [#allocation6 + $0x1], 0  ;;  %s1181_s27 = smov 0   ;;  %s1183_s28 = smov 0  }
   0x7   :  { %s1185_s29 = smov 0   ;;  %s1187_s30 = smov 0  }
   0x8 LB: > { %1390 = sst [smem:[#allocation11_spill]] %s1127_s29  ;;  %s1200_s9 = sadd.s32 4294967295, %s1131_s30   ;;  %s1131_s30 = sphi %s1187_s30, %s1403_s30   ;;  %s1127_s29 = sphi %s1185_s29, %s1400_s29   ;;  %s1123_s28 = sphi %s1183_s28, %s1402_s28   ;;  %s1119_s27 = sphi %s1181_s27, %s1401_s27  }
   0x9   : > { %p92_p0 = scmp.ne.s32.totalorder %s1123_s28, %s1119_s27  ;;  %p93_p1 = scmp.eq.s32.totalorder %s1200_s9, 0 }
   0xa   : > { %p797_p2 = scmp.ge.s32.totalorder %s1131_s30, 1  ;;  %p244_p3 = scmp.lt.s32.totalorder %s1131_s30, 3 }
   0xb   : > { %p798_p4 = scmp.ne.s32.totalorder %s1200_s9, 0  ;;  %p1209_p5 = por %p93_p1, %p92_p0 }
   0xc   : > { %s1392_s5 = sld [smem:[#allocation14_spill]]  ;;  %p1216_p6 = pnand %p797_p2, %p244_p3 }
   0xd   : > { %s1133_s15 = smov [#allocation7]   ;;  %s1225_s17 = sadd.s32 1, %s1131_s30  }
   0xe   : > { %p946_p7 = pneg %p1216_p6  ;;  %s260_s16 = sshll.u32 %s1133_s15, 4  ;;  %s261_s16 = int_to_ptr.vmem [resolvable:$true] %s260_s16 }
   0xf   : > { %s1383_s18 = smov 64   ;;  %s1385_s19 = smov 4  }
  0x10   : > { %p947_p8 = pnand %p946_p7, %p93_p1  ;;  %s76_s20 = ssub.s32 %s1131_s30, %s1225_s17 }
  0x11   : > { %s79_s21 = sadd.s32 1, %s1127_s29  ;;  %p77_p9 = scmp.eq.s32.totalorder %s76_s20, 0 }
  0x12   : > { %s258_s13 = sshll.u32 %s1392_s5, 4  ;;  %p86_p10 = scmp.ne.s32.totalorder %s1127_s29, %s1123_s28  ;;  %s259_s13 = int_to_ptr.hbm [resolvable:$true] %s258_s13 }
  0x13   : > { %949 = dma.hbm_to_vmem [thread:$0]  (!%p947_p8), %s259_s13, 1024, %s261_s16, [#allocation6], %s1383_s18, %s1383_s18, %s1385_s19  }
  0x14   : > { %p87_p11 = scmp.eq.s32.totalorder %s1131_s30, 0  ;;  %p958_p12 = scmp.lt.s32.totalorder %s1131_s30, 2 }
  0x15   : > { %s1238_s22 = scalar_select %p77_p9, %s1127_s29, %s79_s21  }
  0x16   : > { %p88_p13 = por %p87_p11, %p86_p10  ;;  %s284_s23 = sand.u32 1, %s1127_s29  }
  0x17   : > { %1394 = sst [smem:[#allocation12_spill]] %s1238_s22  ;;  %s1241_s24 = sshll.u32 %s284_s23, 6 }
  0x18   : > { %s912_s25 = sshll.u32 %s1131_s30, 6  ;;  %s1395_s2 = sld [smem:[#allocation13_spill]] }
  0x19   : > { %s288_s12 = scalar_lea.vmem [#allocation3], %s1241_s24  ;;  %p1248_p0 = pnand %p958_p12, %p88_p13 }
  0x1a   : > { %s296_s13 = sshll.u32 %s288_s12, 4  ;;  %s315_s18 = scalar_lea.hbm %s1377_s3, %s912_s25  ;;  %s297_s13 = int_to_ptr.vmem [resolvable:$true] %s296_s13 }
  0x1b   : > { %s316_s19 = sshll.u32 %s315_s18, 4  ;;  %s285_s5 = scalar_lea.sflag [#allocation4], %s284_s23  ;;  %s317_s19 = int_to_ptr.hbm [resolvable:$true] %s316_s19 }
  0x1c   : > { %p1033_p3 = pneg %p1248_p0 }
  0x1e   : > { %s293_s11 = scalar_lea.hbm %s1395_s2, %s912_s25  ;;  %s1036_s12 = scalar_lea.hbm %s1395_s2, 128 }
  0x1f   : > { %s294_s15 = sshll.u32 %s293_s11, 4  ;;  %s295_s15 = int_to_ptr.hbm [resolvable:$true] %s294_s15 }
  0x20   : > { %s1029_s22 = sshra.s32 %s295_s15, 4  ;;  %s1030_s22 = int_to_ptr.hbm [resolvable:$true] %s1029_s22 }
  0x21   : > { %s1031_s26 = scalar_lea.hbm %s1030_s22, 64  ;;  %p1037_p9 = scmp.lt.s32.totalorder %s1030_s22, %s1395_s2 }
  0x22   : > { %p1032_p2 = scmp.ne.s32.totalorder %s1030_s22, %s1031_s26  ;;  %p1038_p10 = scmp.lt.s32.totalorder %s1036_s12, %s1031_s26 }
  0x24   : > { %p1034_p7 = pnand %p1033_p3, %p1032_p2  ;;  %p1039_p11 = por %p1038_p10, %p1037_p9 }
  0x26   : > { %p1035_p8 = pneg %p1034_p7 }
  0x28   : > { %p1040_p12 = pnand %p1039_p11, %p1035_p8 }
  0x2a   : > { %1043 = shalt.err (!%p1040_p12)
}
  0x2b   : > { %s1397_s18 = smov 4   ;;  %s1398_s23 = smov 64  }
  0x2c   : > { %953 = dma.hbm_to_vmem [thread:$0]  (!%p1248_p0), %s295_s15, 1024, %s297_s13, %s285_s5, %s1398_s23, %s1398_s23, %s1397_s18  }
  0x2d   : > { %s310_s25 = scalar_lea.vmem [#allocation5], %s1241_s24  ;;  %s306_s11 = sand.u32 1, %s1131_s30  }
  0x2e   : > { %s318_s27 = sshll.u32 %s310_s25, 4  ;;  %s307_s20 = scalar_lea.sflag [#allocation6], %s306_s11  ;;  %s319_s27 = int_to_ptr.vmem [resolvable:$true] %s318_s27 }
  0x2f   : > { %s1059_s22 = sshra.s32 %s317_s19, 4  ;;  %s1066_s2 = scalar_lea.hbm %s1377_s3, 128  ;;  %s1060_s22 = int_to_ptr.hbm [resolvable:$true] %s1059_s22 }
  0x30   : > { %s1061_s26 = scalar_lea.hbm %s1060_s22, 64  ;;  %p1067_p8 = scmp.lt.s32.totalorder %s1060_s22, %s1377_s3 }
  0x31   : > { %p1062_p13 = scmp.ne.s32.totalorder %s1060_s22, %s1061_s26  ;;  %p1068_p9 = scmp.lt.s32.totalorder %s1066_s2, %s1061_s26 }
  0x33   : > { %p1064_p2 = pnand %p1062_p13, %p1033_p3  ;;  %p1069_p10 = por %p1068_p9, %p1067_p8 }
  0x35   : > { %p1065_p7 = pneg %p1064_p2 }
  0x37   : > { %p1070_p11 = pnand %p1069_p10, %p1065_p7 }
  0x39   : > { %1073 = shalt.err (!%p1070_p11)
}
  0x3a   : > { %956 = dma.hbm_to_vmem [thread:$0]  (!%p1248_p0), %s317_s19, 1024, %s319_s27, %s307_s20, %s1398_s23, %s1398_s23, %s1397_s18  }
  0x3b   : > { %336 = sbr.rel (%p1216_p6) target bundleno = 416 (0x1a0), region = 48  ;;  %s338_s30 = sand.u32 (!%p1216_p6), 1, %s1123_s28  }
  0x3c   : > { %s807_s24 = sshll.u32 (!%p1216_p6), %s338_s30, 6  ;;  %s339_s13 = scalar_lea.sflag (!%p1216_p6), [#allocation4], %s338_s30 }
  0x3d   : > { %s1290_s29 = scalar_lea.vmem (!%p1216_p6), [#allocation3], %s807_s24 }
  0x40   : > { %1106 = dma.done.wait (%p1209_p5), %s339_s13, 1024  }
  0x41   : > { %1108 = vsyncadd (%p1209_p5), %s339_s13, 4294966272  ;;  %s348_s2 = sand.u32 1, %s1200_s9   ;;  %s1297_s19 = scalar_lea.vmem [#allocation5], %s807_s24 }
  0x42   : > { %s349_s15 = scalar_lea.sflag [#allocation6], %s348_s2 }
  0x43   : > { %1110 = dma.done.wait (%p1209_p5), %s349_s15, 1024  }
  0x44   : > { %1112 = vsyncadd (%p1209_p5), %s349_s15, 4294966272 }
  0x45   : > { %1114 = dma.done.wait (%p93_p1), [#allocation6], 1024  }
  0x46   : > { %1116 = vsyncadd (%p93_p1), [#allocation6], 4294966272  ;;  %p402_p6 = scmp.lt.s32.totalorder %s1200_s9, 1 }
  0x47   : > { %416 = sbr.rel (%p798_p4) target bundleno = 78 (0x4e), region = 64 }
  0x48   : > { %s1309_s14 = scalar_select %p402_p6, %s1200_s9, 1 }
  0x4a   : > { %s810_s16 = sshll.u32 %s1309_s14, 3  ;;  %s408_s25 = scalar_lea.vmem %s1378_s4, %s1309_s14 }
  0x4b   : > { %s1319_s11 = scalar_lea.vmem %s1375_s1, %s810_s16  ;;  %s1324_s26 = scalar_lea.vmem %s1382_s8, %s810_s16 }
  0x4c   : > { %v417_v0 = vld [vmem:[%s1374_s0] sm:$0xff] }
  0x4d   : > { %418 = vst [vmem:[#allocation2] sm:$0xff] %v417_v0 }
  0x4e PF: > { %v929_v1 = vld [vmem:[%s1297_s19 + $0x38] sm:$0xff]  ;;  %v928_v3 = vld [vmem:[%s1297_s19 + $0x30] sm:$0xff]  ;;  %v927_v5 = vld [vmem:[%s1297_s19 + $0x28] sm:$0xff]  ;;  %p877_p1 = scmp.ne.s32.totalorder %s1200_s9, 1 }
  0x4f   : > { %v921_v2 = vld [vmem:[%s1290_s29 + $0x38] sm:$0xff]  ;;  %503 = vmatpush.bf16.msra.mxu0 %v929_v1  ;;  %v920_v4 = vld [vmem:[%s1290_s29 + $0x30] sm:$0xff]  ;;  %v919_v6 = vld [vmem:[%s1290_s29 + $0x28] sm:$0xff] }
  0x50   : > { %564 = vmatpush.bf16.msra.mxu1 %v921_v2  ;;  %v926_v7 = vld [vmem:[%s1297_s19 + $0x20] sm:$0xff]  ;;  %v925_v9 = vld [vmem:[%s1297_s19 + $0x18] sm:$0xff]  ;;  %v924_v11 = vld [vmem:[%s1297_s19 + $0x10] sm:$0xff] }
  0x51   : > { %v918_v8 = vld [vmem:[%s1290_s29 + $0x20] sm:$0xff]  ;;  %v917_v10 = vld [vmem:[%s1290_s29 + $0x18] sm:$0xff]  ;;  %v916_v12 = vld [vmem:[%s1290_s29 + $0x10] sm:$0xff] }
  0x52   : > { %v923_v13 = vld [vmem:[%s1297_s19 + $0x8] sm:$0xff]  ;;  %v922_v15 = vld [vmem:[%s1297_s19] sm:$0xff]  ;;  %v437_v17 = vld [vmem:[%s1319_s11] sm:$0xff] }
  0x53   : > { %504 = vmatpush.bf16.msra.mxu0 %v928_v3  ;;  %v915_v14 = vld [vmem:[%s1290_s29 + $0x8] sm:$0xff]  ;;  %v914_v16 = vld [vmem:[%s1290_s29] sm:$0xff]  ;;  %v438_v19 = vpack.c.bf16 %v437_v17, %v437_v17  ;;  %v995_v21 = vld [vmem:[%s408_s25] ss:$0 sm:$0xff] }
  0x54   : > { %565 = vmatpush.bf16.msra.mxu1 %v920_v4  ;;  %v419_v18 = vld [vmem:[#allocation2] sm:$0xff] }
  0x55   : > { %v420_v20 = vpack.c.bf16 %v419_v18, %v419_v18 }
  0x57   : > { %505 = vmatpush.bf16.msra.mxu0 %v927_v5 }
  0x58   : > { %566 = vmatpush.bf16.msra.mxu1 %v919_v6 }
  0x5b   : > { %506 = vmatpush.bf16.msra.mxu0 %v926_v7 }
  0x5c   : > { %567 = vmatpush.bf16.msra.mxu1 %v918_v8 }
  0x5f   : > { %507 = vmatpush.bf16.msra.mxu0 %v925_v9 }
  0x60   : > { %568 = vmatpush.bf16.msra.mxu1 %v917_v10 }
  0x63   : > { %508 = vmatpush.bf16.msra.mxu0 %v924_v11 }
  0x64   : > { %569 = vmatpush.bf16.msra.mxu1 %v916_v12 }
  0x67   : > { %509 = vmatpush.bf16.msra.mxu0 %v923_v13 }
  0x68   : > { %570 = vmatpush.bf16.msra.mxu1 %v915_v14 }
  0x6b   : > { %510 = vmatpush.bf16.msra.mxu0 %v922_v15 }
  0x6c   : > { %571 = vmatpush.bf16.msra.mxu1 %v914_v16 }
  0x6e   : > { %511 = vmatmul.bf16.vlgmr.msra.gmra.mxu0 %v438_v19 }
  0x6f   : > { %572 = vmatmul.bf16.vlgmr.msra.gmra.mxu1 %v420_v20 }
  0xeb   : > { %v512_v22 = vpop.f32.mrf.mxu0 }
  0xec   : > { %v573_v23 = vpop.f32.mrf.mxu1 }
  0xed   : > { %v574_v24 = vadd.f32 %v573_v23, %v512_v22 }
  0xef   : > { %v581_v25 = vadd.f32 %v995_v21, %v574_v24 }
  0xf1   : > { %996 = vtanh.f32 %v581_v25 }
  0xf3   : > { %v514_v26 = vpop.f32.mrf.mxu0 }
  0xf4   : > { %v575_v27 = vpop.f32.mrf.mxu1 }
  0xf5   : > { %588 = sbr.rel (%p877_p1) target bundleno = 416 (0x1a0), region = 68 }
  0xf7   : > { %v997_v28 = vpop.eup %996 }
  0xf8   : > { %583 = vst [vmem:[%s1324_s26] sm:$0xff] %v997_v28 }
  0xf9   : > { %584 = vst [vmem:[#allocation2] sm:$0xff] %v997_v28 }
  0xfa   : > { %v937_v29 = vld [vmem:[#allocation7 + $0x38] sm:$0xff]  ;;  %v936_v30 = vld [vmem:[#allocation7 + $0x30] sm:$0xff]  ;;  %v935_v31 = vld [vmem:[#allocation7 + $0x28] sm:$0xff]  ;;  %v589_v37 = vpack.c.bf16 %v997_v28, %v997_v28 }
  0xfb   : > { %658 = vmatpush.bf16.msra.mxu0 %v937_v29  ;;  %v934_v32 = vld [vmem:[#allocation7 + $0x20] sm:$0xff]  ;;  %v933_v33 = vld [vmem:[#allocation7 + $0x18] sm:$0xff]  ;;  %v932_v34 = vld [vmem:[#allocation7 + $0x10] sm:$0xff] }
  0xfc   : > { %v931_v35 = vld [vmem:[#allocation7 + $0x8] sm:$0xff]  ;;  %v930_v36 = vld [vmem:[#allocation7] sm:$0xff]  ;;  %v998_v38 = vld [vmem:[%s1380_s6] ss:$0 sm:$0xff] }
  0xff   : > { %659 = vmatpush.bf16.msra.mxu0 %v936_v30 }
 0x103   : > { %660 = vmatpush.bf16.msra.mxu0 %v935_v31 }
 0x107   : > { %661 = vmatpush.bf16.msra.mxu0 %v934_v32 }
 0x10b   : > { %662 = vmatpush.bf16.msra.mxu0 %v933_v33 }
 0x10f   : > { %663 = vmatpush.bf16.msra.mxu0 %v932_v34 }
 0x113   : > { %664 = vmatpush.bf16.msra.mxu0 %v931_v35 }
 0x117   : > { %665 = vmatpush.bf16.msra.mxu0 %v930_v36 }
 0x11a   : > { %666 = vmatmul.bf16.vlgmr.msra.gmra.mxu0 %v589_v37 }
 0x197   : > { %v667_v39 = vpop.f32.mrf.mxu0 }
 0x198   : > { %v668_v40 = vadd.f32 %v998_v38, %v667_v39 }
 0x19a   : > { %671 = vst [vmem:[%s1381_s7] sm:$0xff] %v668_v40 }
 0x19f   : > { %v669_v41 = vpop.f32.mrf.mxu0 }
 0x1a0 PF: > { %s1399_s2 = sld [smem:[#allocation11_spill]]  ;;  %p22_p4 = scmp.ge.s32.totalorder %s1225_s17, 4  }
 0x1a1   : > { %s1400_s29 = sld [smem:[#allocation12_spill]]  ;;  %s1401_s27 = smov %s1123_s28 }
 0x1a2   : > { %s1403_s30 = smov %s1225_s17  ;;  %24 = sbr.rel (!%p22_p4) target bundleno = 8 (0x8), region = 127 }
 0x1a6   : > { %s1402_s28 = smov %s1399_s2 }
 0x1a7   :  { %697 = vsyncpa [#allocation4], 1 }
 0x1a8   :  { %699 = vsyncpa [#allocation4 + $0x1], 1 }
 0x1a9   :  { %700 = vsyncpa [#allocation6], 1 }
 0x1aa   :  { %702 = vsyncpa [#allocation6 + $0x1], 1 }

</bundles_post_ra>
